<compile_context>
chip_gen: v6e
topology: v6e:2x2x1
jax: 0.10.0
libtpu: 0.0.40
codegen_flags: <defaults>
</compile_context>

<pallas_src>
import functools
import math

import jax
import jax.numpy as jnp
from jax import lax
from jax.experimental import pallas as pl
from jax.experimental.pallas import tpu as pltpu

INPUT_DIM = 5
HIDDEN_DIM = 16
OUTPUT_DIM = 3

LANE_CHUNK = 512            # batch rows per lane chunk (multiple of 128)
DEFAULT_TILE_B = 8192       # batch rows per grid step (multiple of LANE_CHUNK)
SMALL_BATCH_THRESHOLD = 512 # below this, skip Pallas entirely


def _batch_dim_semantics():
    """CORE_PARALLEL on 2-TC chips (v7x); PARALLEL elsewhere."""
    try:
        kind = jax.devices()[0].device_kind.lower()
    except Exception:  # pragma: no cover - defensive
        kind = ""
    if "v7" in kind:
        return (pltpu.CORE_PARALLEL,)
    return (pltpu.PARALLEL,)


def dqn_kernel(x_ref, w1_ref, b1_ref, w2_ref, b2_ref, w3_ref, b3_ref, out_ref):
    # x_ref:   (chunks_per_tile, INPUT_DIM,  LANE_CHUNK)   batch on lanes
    # out_ref: (chunks_per_tile, OUTPUT_DIM, LANE_CHUNK)
    # Weights are PyTorch-layout (out_dim, in_dim), so h = W @ x directly.
    chunks_per_tile = x_ref.shape[0]

    def one_chunk(c, carry):
        xs = x_ref[c]                                        # (INPUT_DIM, LANE_CHUNK)
        h1 = jnp.dot(w1_ref[...], xs,
                     preferred_element_type=jnp.float32) + b1_ref[...]
        h1 = jnp.maximum(h1, 0.0)
        h2 = jnp.dot(w2_ref[...], h1.astype(w2_ref.dtype),
                     preferred_element_type=jnp.float32) + b2_ref[...]
        h2 = jnp.maximum(h2, 0.0)
        q = jnp.dot(w3_ref[...], h2.astype(w3_ref.dtype),
                    preferred_element_type=jnp.float32) + b3_ref[...]
        out_ref[c] = q.astype(out_ref.dtype)                 # lane-dense store
        return carry

    lax.fori_loop(0, chunks_per_tile, one_chunk, 0)


def _dqn_xla(x, w1, b1, w2, b2, w3, b3):
    """Plain XLA path (used for small batches; identical math)."""
    h1 = jnp.maximum(x @ w1.T + b1, 0.0)
    h2 = jnp.maximum(h1 @ w2.T + b2, 0.0)
    return h2 @ w3.T + b3


@functools.partial(
    jax.jit, static_argnames=("tile_b", "compute_dtype", "small_batch_threshold"))
def dqn_forward(x, params, *, tile_b=DEFAULT_TILE_B, compute_dtype=None,
                small_batch_threshold=SMALL_BATCH_THRESHOLD):
    """Q-value forward pass.  x: (B, INPUT_DIM) float -> (B, OUTPUT_DIM) float32."""
    w1, b1, w2, b2, w3, b3 = params
    B = x.shape[0]

    # Small-batch fast path: a single env step (B ~ 8) should never pay Pallas
    # launch overhead.
    if B < small_batch_threshold:
        return _dqn_xla(x.astype(jnp.float32), w1, b1, w2, b2, w3, b3)

    if compute_dtype is not None:
        # Optional reduced-precision MXU path (f32 accumulation via
        # preferred_element_type).  Only worth it at very large B on v5e/v6e.
        x = x.astype(compute_dtype)
        w1 = w1.astype(compute_dtype)
        w2 = w2.astype(compute_dtype)
        w3 = w3.astype(compute_dtype)

    # Biases stay f32 and are shaped (out_dim, 1) so they broadcast along lanes.
    b1c = b1.reshape(HIDDEN_DIM, 1).astype(jnp.float32)
    b2c = b2.reshape(HIDDEN_DIM, 1).astype(jnp.float32)
    b3c = b3.reshape(OUTPUT_DIM, 1).astype(jnp.float32)

    # ---- feature-major / batch-on-lanes layout -------------------------------
    n_chunks = pl.cdiv(B, LANE_CHUNK)
    b_pad = n_chunks * LANE_CHUNK
    if b_pad != B:
        x = jnp.pad(x, ((0, b_pad - B), (0, 0)))
    # x3[c, d, j] = x[c*LANE_CHUNK + j, d]  -> (n_chunks, INPUT_DIM, LANE_CHUNK)
    x3 = x.T.reshape(INPUT_DIM, n_chunks, LANE_CHUNK).transpose(1, 0, 2)

    chunks_per_tile = max(1, min(tile_b // LANE_CHUNK, n_chunks))
    grid = (pl.cdiv(n_chunks, chunks_per_tile),)

    # Weights/biases: full-array block, constant index_map -> VMEM-resident,
    # DMA'd once for the whole grid.
    def resident(a):
        return pl.BlockSpec(a.shape, lambda i: (0,) * a.ndim)

    flops = 2 * B * (INPUT_DIM * HIDDEN_DIM
                     + HIDDEN_DIM * HIDDEN_DIM
                     + HIDDEN_DIM * OUTPUT_DIM)
    weight_bytes = sum(int(a.size) * a.dtype.itemsize
                       for a in (w1, b1c, w2, b2c, w3, b3c))
    bytes_accessed = (int(x3.size) * x3.dtype.itemsize
                      + b_pad * OUTPUT_DIM * 4
                      + weight_bytes)

    out3 = pl.pallas_call(
        dqn_kernel,
        out_shape=jax.ShapeDtypeStruct((n_chunks, OUTPUT_DIM, LANE_CHUNK),
                                       jnp.float32),
        grid=grid,
        in_specs=[
            pl.BlockSpec((chunks_per_tile, INPUT_DIM, LANE_CHUNK),
                         lambda i: (i, 0, 0)),                      # x: batch-tiled
            resident(w1), resident(b1c),
            resident(w2), resident(b2c),
            resident(w3), resident(b3c),
        ],
        out_specs=pl.BlockSpec((chunks_per_tile, OUTPUT_DIM, LANE_CHUNK),
                               lambda i: (i, 0, 0)),
        compiler_params=pltpu.CompilerParams(
            dimension_semantics=_batch_dim_semantics()),
        cost_estimate=pl.CostEstimate(flops=flops, transcendentals=0,
                                      bytes_accessed=bytes_accessed),
    )(x3, w1, b1c, w2, b2c, w3, b3c)

    # (n_chunks, OUTPUT_DIM, LANE_CHUNK) -> (B, OUTPUT_DIM)
    return out3.transpose(0, 2, 1).reshape(b_pad, OUTPUT_DIM)[:B]


def init_params(key):
    """PyTorch-style init: W (out_dim, in_dim), b (out_dim,), U(-1/sqrt(fan_in), .)."""
    ks = jax.random.split(key, 6)

    def linear(kw, kb, fan_in, fan_out):
        bound = 1.0 / math.sqrt(fan_in)
        w = jax.random.uniform(kw, (fan_out, fan_in), jnp.float32, -bound, bound)
        b = jax.random.uniform(kb, (fan_out,), jnp.float32, -bound, bound)
        return w, b

    w1, b1 = linear(ks[0], ks[1], INPUT_DIM, HIDDEN_DIM)
    w2, b2 = linear(ks[2], ks[3], HIDDEN_DIM, HIDDEN_DIM)
    w3, b3 = linear(ks[4], ks[5], HIDDEN_DIM, OUTPUT_DIM)
    return (w1, b1, w2, b2, w3, b3)


def dqn_reference(x, params):
    w1, b1, w2, b2, w3, b3 = params
    h1 = jnp.maximum(x @ w1.T + b1, 0.0)
    h2 = jnp.maximum(h1 @ w2.T + b2, 0.0)
    return h2 @ w3.T + b3


if __name__ == "__main__":
    key = jax.random.PRNGKey(0)
    k_params, k_x, k_x2 = jax.random.split(key, 3)
    params = init_params(k_params)

    # Batched inference through the Pallas path (single grid step, 2 lane chunks).
    B = 1024
    x = jax.random.normal(k_x, (B, INPUT_DIM), jnp.float32)
    out = jax.block_until_ready(dqn_forward(x, params))
    ref = dqn_reference(x, params)
    assert out.shape == (B, OUTPUT_DIM)
    assert out.dtype == jnp.float32
    assert jnp.allclose(out, ref, atol=1e-5, rtol=1e-5)

    # Ragged batch + multi-step grid: B=2500 -> 5 lane chunks, 2 chunks/tile,
    # grid=3 with a ragged last tile and a padded tail inside the last chunk.
    B2 = 2500
    x2 = jax.random.normal(k_x2, (B2, INPUT_DIM), jnp.float32)
    out2 = jax.block_until_ready(dqn_forward(x2, params, tile_b=1024))
    ref2 = dqn_reference(x2, params)
    assert out2.shape == (B2, OUTPUT_DIM)
    assert jnp.allclose(out2, ref2, atol=1e-5, rtol=1e-5)

    # Optional bf16 compute path (f32 accumulation on the MXU).
    out_bf16 = jax.block_until_ready(
        dqn_forward(x, params, compute_dtype=jnp.bfloat16))
    assert jnp.allclose(out_bf16, ref, atol=5e-2, rtol=5e-2)

    # Tiny batch (single env step) takes the automatic XLA fast path.
    x_small = x[:8]
    out_small = jax.block_until_ready(dqn_forward(x_small, params))
    assert jnp.allclose(out_small, ref[:8], atol=1e-5, rtol=1e-5)

    print("KERNEL_OK")
</pallas_src>

<mosaic_0001>
module attributes {stable_mosaic.version = 11 : i64} {
  func.func @dqn_kernel(%arg0: i32, %arg1: memref<2x5x512xf32, #tpu.memory_space<vmem>>, %arg2: memref<16x5xf32, #tpu.memory_space<vmem>>, %arg3: memref<16x1xf32, #tpu.memory_space<vmem>>, %arg4: memref<16x16xf32, #tpu.memory_space<vmem>>, %arg5: memref<16x1xf32, #tpu.memory_space<vmem>>, %arg6: memref<3x16xf32, #tpu.memory_space<vmem>>, %arg7: memref<3x1xf32, #tpu.memory_space<vmem>>, %arg8: memref<2x3x512xf32, #tpu.memory_space<vmem>>) attributes {dimension_semantics = [#tpu.dimension_semantics<parallel>], iteration_bounds = array<i64: 1>, scalar_prefetch = 0 : i64, scratch_operands = 0 : i64, tpu.core_type = #tpu.core_type<tc>, window_params = [{transform_indices = @transform_0, window_bounds = array<i64: 2, 5, 512>}, {pipeline_mode = #tpu.pipeline_mode<synchronous>, transform_indices = @transform_1, window_bounds = array<i64: 16, 5>}, {pipeline_mode = #tpu.pipeline_mode<synchronous>, transform_indices = @transform_2, window_bounds = array<i64: 16, 1>}, {pipeline_mode = #tpu.pipeline_mode<synchronous>, transform_indices = @transform_3, window_bounds = array<i64: 16, 16>}, {pipeline_mode = #tpu.pipeline_mode<synchronous>, transform_indices = @transform_4, window_bounds = array<i64: 16, 1>}, {pipeline_mode = #tpu.pipeline_mode<synchronous>, transform_indices = @transform_5, window_bounds = array<i64: 3, 16>}, {pipeline_mode = #tpu.pipeline_mode<synchronous>, transform_indices = @transform_6, window_bounds = array<i64: 3, 1>}, {transform_indices = @transform_7, window_bounds = array<i64: 2, 3, 512>}]} {
    %c0_i32 = arith.constant 0 : i32
    %c2_i32 = arith.constant 2 : i32
    %0 = arith.addi %c0_i32, %c2_i32 : i32
    %c1_i32 = arith.constant 1 : i32
    scf.for %arg9 = %c0_i32 to %0 step %c1_i32  : i32 {
      %1 = arith.index_cast %arg9 : i32 to index
      %c0 = arith.constant 0 : index
      %c0_1 = arith.constant 0 : index
      %2 = vector.load %arg1[%1, %c0, %c0_1] : memref<2x5x512xf32, #tpu.memory_space<vmem>>, vector<1x5x512xf32>
      %3 = vector.shape_cast %2 : vector<1x5x512xf32> to vector<5x512xf32>
      %c0_2 = arith.constant 0 : index
      %c0_3 = arith.constant 0 : index
      %4 = vector.load %arg2[%c0_2, %c0_3] : memref<16x5xf32, #tpu.memory_space<vmem>>, vector<16x5xf32>
      %cst = arith.constant dense<0.000000e+00> : vector<16x512xf32>
      %5 = tpu.matmul %4, %3, %cst {dimension_numbers = #tpu.dot_dimension_numbers<[1], [0], [0], [1], [0, 0, 1, 1], [], []>} : vector<16x5xf32>, vector<5x512xf32>, vector<16x512xf32> -> vector<16x512xf32>
      %c0_4 = arith.constant 0 : index
      %c0_5 = arith.constant 0 : index
      %6 = vector.load %arg3[%c0_4, %c0_5] : memref<16x1xf32, #tpu.memory_space<vmem>>, vector<16x1xf32>
      %7 = vector.broadcast %6 : vector<16x1xf32> to vector<16x512xf32>
      %8 = arith.addf %5, %7 : vector<16x512xf32>
      %cst_6 = arith.constant 0.000000e+00 : f32
      %9 = vector.broadcast %cst_6 : f32 to vector<16x512xf32>
      %10 = arith.maximumf %8, %9 : vector<16x512xf32>
      %c0_7 = arith.constant 0 : index
      %c0_8 = arith.constant 0 : index
      %11 = vector.load %arg4[%c0_7, %c0_8] : memref<16x16xf32, #tpu.memory_space<vmem>>, vector<16x16xf32>
      %cst_9 = arith.constant dense<0.000000e+00> : vector<16x512xf32>
      %12 = tpu.matmul %11, %10, %cst_9 {dimension_numbers = #tpu.dot_dimension_numbers<[1], [0], [0], [1], [0, 0, 1, 1], [], []>} : vector<16x16xf32>, vector<16x512xf32>, vector<16x512xf32> -> vector<16x512xf32>
      %c0_10 = arith.constant 0 : index
      %c0_11 = arith.constant 0 : index
      %13 = vector.load %arg5[%c0_10, %c0_11] : memref<16x1xf32, #tpu.memory_space<vmem>>, vector<16x1xf32>
      %14 = vector.broadcast %13 : vector<16x1xf32> to vector<16x512xf32>
      %15 = arith.addf %12, %14 : vector<16x512xf32>
      %cst_12 = arith.constant 0.000000e+00 : f32
      %16 = vector.broadcast %cst_12 : f32 to vector<16x512xf32>
      %17 = arith.maximumf %15, %16 : vector<16x512xf32>
      %c0_13 = arith.constant 0 : index
      %c0_14 = arith.constant 0 : index
      %18 = vector.load %arg6[%c0_13, %c0_14] : memref<3x16xf32, #tpu.memory_space<vmem>>, vector<3x16xf32>
      %cst_15 = arith.constant dense<0.000000e+00> : vector<3x512xf32>
      %19 = tpu.matmul %18, %17, %cst_15 {dimension_numbers = #tpu.dot_dimension_numbers<[1], [0], [0], [1], [0, 0, 1, 1], [], []>} : vector<3x16xf32>, vector<16x512xf32>, vector<3x512xf32> -> vector<3x512xf32>
      %c0_16 = arith.constant 0 : index
      %c0_17 = arith.constant 0 : index
      %20 = vector.load %arg7[%c0_16, %c0_17] : memref<3x1xf32, #tpu.memory_space<vmem>>, vector<3x1xf32>
      %21 = vector.broadcast %20 : vector<3x1xf32> to vector<3x512xf32>
      %22 = arith.addf %19, %21 : vector<3x512xf32>
      %23 = arith.index_cast %arg9 : i32 to index
      %c0_18 = arith.constant 0 : index
      %c0_19 = arith.constant 0 : index
      %24 = vector.load %arg8[%23, %c0_18, %c0_19] : memref<2x3x512xf32, #tpu.memory_space<vmem>>, vector<1x3x512xf32>
      %25 = vector.shape_cast %24 : vector<1x3x512xf32> to vector<3x512xf32>
      %26 = vector.shape_cast %22 : vector<3x512xf32> to vector<1x3x512xf32>
      tpu.vector_store %arg8[%23, %c0_18, %c0_19], %26 {strides = array<i32>} : memref<2x3x512xf32, #tpu.memory_space<vmem>>, vector<1x3x512xf32>,
    }
    %c2_i32_0 = arith.constant 2 : i32
    return
  }
  func.func @transform_0(%arg0: i32) -> (i32, i32, i32) {
    %c0_i32 = arith.constant 0 : i32
    %c0_i32_0 = arith.constant 0 : i32
    %c0_i32_1 = arith.constant 0 : i32
    return %arg0, %c0_i32, %c0_i32_0 : i32, i32, i32
  }
  func.func @transform_1(%arg0: i32) -> (i32, i32) {
    %c0_i32 = arith.constant 0 : i32
    %c0_i32_0 = arith.constant 0 : i32
    %c0_i32_1 = arith.constant 0 : i32
    return %c0_i32, %c0_i32_0 : i32, i32
  }
  func.func @transform_2(%arg0: i32) -> (i32, i32) {
    %c0_i32 = arith.constant 0 : i32
    %c0_i32_0 = arith.constant 0 : i32
    %c0_i32_1 = arith.constant 0 : i32
    return %c0_i32, %c0_i32_0 : i32, i32
  }
  func.func @transform_3(%arg0: i32) -> (i32, i32) {
    %c0_i32 = arith.constant 0 : i32
    %c0_i32_0 = arith.constant 0 : i32
    %c0_i32_1 = arith.constant 0 : i32
    return %c0_i32, %c0_i32_0 : i32, i32
  }
  func.func @transform_4(%arg0: i32) -> (i32, i32) {
    %c0_i32 = arith.constant 0 : i32
    %c0_i32_0 = arith.constant 0 : i32
    %c0_i32_1 = arith.constant 0 : i32
    return %c0_i32, %c0_i32_0 : i32, i32
  }
  func.func @transform_5(%arg0: i32) -> (i32, i32) {
    %c0_i32 = arith.constant 0 : i32
    %c0_i32_0 = arith.constant 0 : i32
    %c0_i32_1 = arith.constant 0 : i32
    return %c0_i32, %c0_i32_0 : i32, i32
  }
  func.func @transform_6(%arg0: i32) -> (i32, i32) {
    %c0_i32 = arith.constant 0 : i32
    %c0_i32_0 = arith.constant 0 : i32
    %c0_i32_1 = arith.constant 0 : i32
    return %c0_i32, %c0_i32_0 : i32, i32
  }
  func.func @transform_7(%arg0: i32) -> (i32, i32, i32) {
    %c0_i32 = arith.constant 0 : i32
    %c0_i32_0 = arith.constant 0 : i32
    %c0_i32_1 = arith.constant 0 : i32
    return %arg0, %c0_i32, %c0_i32_0 : i32, i32, i32
  }
}

</mosaic_0001>

<bundles_post_ra>
// kernel: dqn_forward.1
= control target key start
LH: loop header
LB: loop body
LE: loop exit
PB: predicated region body
PF: predicated region fallthrough
CT: control target
= control target key end

     0   :  { %12 = vsyncpa [#allocation3], 0  ;;  %s823_s0 = inlined_call_operand.vmem [shape: f32[2,5,512], index: 0, kind: input, shape index: {}]   ;;  %s824_s1 = inlined_call_operand.vmem [shape: f32[16,5], index: 1, kind: input, shape index: {}]   ;;  %s825_s2 = inlined_call_operand.vmem [shape: f32[16,1], index: 2, kind: input, shape index: {}]   ;;  %s826_s3 = inlined_call_operand.hbm [shape: f32[16,16], index: 3, kind: input, shape index: {}]   ;;  %s827_s4 = inlined_call_operand.vmem [shape: f32[16,1], index: 4, kind: input, shape index: {}]   ;;  %s828_s5 = inlined_call_operand.vmem [shape: f32[3,16], index: 5, kind: input, shape index: {}]   ;;  %s829_s6 = inlined_call_operand.vmem [shape: f32[3,1], index: 6, kind: input, shape index: {}]   ;;  %s830_s7 = inlined_call_operand.hbm [shape: f32[2,3,512], index: 7, kind: output, shape index: {}]  }
   0x1   :  { %13 = vsyncpa [#allocation4], 0  ;;  %s712_s24 = smov [#allocation2]  }
   0x2   :  { %s25_s25 = sshll.u32 %s712_s24, 4  ;;  %s26_s25 = int_to_ptr.vmem [resolvable:$true] %s25_s25 }
   0x3   :  { %s668_s26 = scalar_lea.vmem %s26_s25, 256  ;;  %p673_p1 = scmp.lt.s32.totalorder %s26_s25, %s26_s25 }
   0x4   :  { %p669_p0 = scmp.ne.s32.totalorder %s26_s25, %s668_s26  ;;  %p674_p2 = scmp.lt.s32.totalorder %s668_s26, %s668_s26 }
   0x6   :  { %p675_p3 = por %p674_p2, %p673_p1 }
   0x8   :  { %p676_p4 = pnand %p675_p3, %p669_p0 }
   0xa   :  { %679 = shalt.err (!%p676_p4)
}
   0xb   :  { %s713_s27 = smov 128   ;;  %s714_s28 = smov 8  }
   0xc   :  { %31 = dma.hbm_to_vmem [thread:$0]  %s826_s3, 256, %s26_s25, [#allocation3], %s713_s27, %s713_s27, %s714_s28  }
   0xd   :  { %704 = dma.done.wait [#allocation3], 256  }
   0xe   :  { %705 = vsyncadd [#allocation3], 4294967040  ;;  %s763_s8 = smov 0  }
   0xf LB: > { %v715_v0 = vmov 0.0   ;;  %v57_v1 = vld [vmem:[%s825_s2 + $0x8] sm:$0xff]  ;;  %s640_s3 = sshll.u32 %s710_s8, 5  ;;  %vm75_vm0 = vcmask 1044480   ;;  %v716_v2 = vmov 0   ;;  %v54_v3 = vld [vmem:[%s824_s1] sm:$0xff]  ;;  %s710_s8 = sphi %s763_s8, %s46_s8  }
  0x10   : > { %152 = vmatprep.mubr.f32.mxu0 %v715_v0  ;;  %229 = vmatprep.mubr.f32.mxu1 %v715_v0  ;;  %s49_s13 = scalar_lea.vmem %s823_s0, %s640_s3  ;;  %vm68_vm1 = vcmask 39936   ;;  %v56_v8 = vld [vmem:[%s825_s2] sm:$0xff]  ;;  %v55_v9 = vld [vmem:[%s824_s1 + $0x8] sm:$0xff]  ;;  %vm264_vm2 = vcmask 130048   ;;  %s641_s28 = sshll.u32 %s710_s8, 4 }
  0x11   : > { %658 = vset.pattern.permute.xlu0 %v716_v2  ;;  %659 = vset.pattern.permute.xlu1 %v716_v2  ;;  %v51_v4 = vld [vmem:[%s49_s13 + $0x8] sm:$0x1f]  ;;  %v53_v5 = vld [vmem:[%s49_s13 + $0x18] sm:$0x1f]  ;;  %v50_v6 = vld [vmem:[%s49_s13] sm:$0x1f] }
  0x12   : > { %65 = vperm.xlu0 %658, %v57_v1   ;;  %625 = vmatprep.subr.msk.mxu0 %vm75_vm0, %v51_v4  ;;  %v52_v7 = vld [vmem:[%s49_s13 + $0x10] sm:$0x1f]  ;;  %v434_v10 = vld [vmem:[%s829_s6] sm:$0x7]  ;;  %v253_v11 = vld [vmem:[%s827_s4 + $0x8] sm:$0xff]  ;;  %s594_s29 = scalar_lea.vmem [#allocation5], %s641_s28 }
  0x13   : > { %629 = vmatprep.subr.msk.mxu1 %vm75_vm0, %v53_v5  ;;  %626 = vmatpush1.msk.msra.mxu0 %vm75_vm0, %v50_v6  ;;  %v252_v12 = vld [vmem:[%s827_s4] sm:$0xff]  ;;  %v251_v40 = vld [vmem:[#allocation2 + $0x8] sm:$0xff]  ;;  %s46_s8 = sadd.s32 1, %s710_s8  }
  0x14   : > { %630 = vmatpush1.msk.msra.mxu1 %vm75_vm0, %v52_v7  ;;  %627 = vmatmul.mubr.msk.f32.vlgmr.msra.gmra.mxu0 %vm68_vm1, %v54_v3  ;;  %v250_v39 = vld [vmem:[#allocation2] sm:$0xff]  ;;  %p43_p5 = scmp.ge.s32.totalorder %s46_s8, 2  }
  0x15   : > { %631 = vmatmul.mubr.msk.f32.vlgmr.msra.gmra.mxu1 %vm68_vm1, %v54_v3  ;;  %158 = vmatprep.mubr.f32.mxu0 %v715_v0  ;;  %v433_v3 = vld [vmem:[%s828_s5] sm:$0x7]  ;;  %s717_s30 = smov (%p43_p5), [#allocation5]  }
  0x16   : > { %235 = vmatprep.mubr.f32.mxu1 %v715_v0  ;;  %60 = vperm.xlu0 %658, %v56_v8   ;;  %s602_s9 = sshll.u32 (%p43_p5), %s717_s30, 4  ;;  %s603_s9 = int_to_ptr.vmem [resolvable:$true] %s602_s9 }
  0x17   : > { %261 = vperm.xlu1 %659, %v253_v11   ;;  %s680_s10 = scalar_lea.vmem (%p43_p5), %s603_s9, 512  ;;  %p685_p7 = scmp.lt.s32.totalorder (%p43_p5), %s603_s9, %s603_s9 }
  0x18   : > { %628 = vmatmul.mubr.msk.f32.gmra.mxu0 %vm68_vm1, %v55_v9  ;;  %p681_p6 = scmp.ne.s32.totalorder (%p43_p5), %s603_s9, %s680_s10  ;;  %p686_p8 = scmp.lt.s32.totalorder (%p43_p5), %s680_s10, %s680_s10 }
  0x19   : > { %632 = vmatmul.mubr.msk.f32.gmra.mxu1 %vm68_vm1, %v55_v9  ;;  %335 = vmatprep.mubr.f32.mxu0 %v715_v0 }
  0x1a   : > { %412 = vmatprep.mubr.f32.mxu1 %v715_v0  ;;  %437 = vperm.xlu0 %658, %v434_v10   ;;  %p687_p9 = por (%p43_p5), %p686_p8, %p685_p7 }
  0x1b   : > { %256 = vperm.xlu1 %659, %v252_v12  }
  0x1c   :  { %p688_p10 = pnand (%p43_p5), %p687_p9, %p681_p6 }
  0x8d   : > { %v66_v13 = vpop.permute.xlu0 %65 }
  0x91   : > { %v61_v20 = vpop.permute.xlu0 %60 }
  0x92   : > { %v262_v41 = vpop.permute.xlu1 %261 }
  0x95   : > { %v438_v6 = vpop.permute.xlu0 %437 }
  0x96   : > { %v257_v48 = vpop.permute.xlu1 %256 }
  0xd4   : > { %v154_v14 = vpop.f32.mrf.mxu0 }
  0xd5   : > { %v231_v15 = vpop.f32.mrf.mxu1  ;;  %v155_v29 = vadd.f32 %v154_v14, %v61_v20 }
  0xd6   : > { %v156_v16 = vpop.f32.mrf.mxu0  ;;  %v232_v30 = vadd.f32 %v231_v15, %v61_v20 }
  0xd7   : > { %v233_v17 = vpop.f32.mrf.mxu1  ;;  %v157_v25 = vadd.f32 %v156_v16, %v61_v20  ;;  %v242_v37 = vmax.f32 %v155_v29, 0.0 }
  0xd8   : > { %v160_v18 = vpop.f32.mrf.mxu0  ;;  %v234_v26 = vadd.f32 %v233_v17, %v61_v20  ;;  %v244_v38 = vmax.f32 %v232_v30, 0.0 }
  0xd9   : > { %v237_v19 = vpop.f32.mrf.mxu1  ;;  %v161_v21 = vadd.f32 %v160_v18, %v66_v13  ;;  %v243_v35 = vmax.f32 %v157_v25, 0.0 }
  0xda   : > { %v238_v22 = vadd.f32 %v237_v19, %v66_v13  ;;  %v162_v23 = vpop.f32.mrf.mxu0  ;;  %v245_v36 = vmax.f32 %v234_v26, 0.0 }
  0xdb   : > { %v239_v24 = vpop.f32.mrf.mxu1  ;;  %v163_v27 = vadd.f32 %v162_v23, %v66_v13  ;;  %v246_v33 = vmax.f32 %v161_v21, 0.0 }
  0xdc   : > { %v240_v28 = vadd.f32 %v239_v24, %v66_v13  ;;  %v248_v34 = vmax.f32 %v238_v22, 0.0 }
  0xdd   : > { %v247_v31 = vmax.f32 %v163_v27, 0.0 }
  0xde   : > { %v249_v32 = vmax.f32 %v240_v28, 0.0 }
  0xdf   : > { %299 = vmatprep.subr.mxu0 %v247_v31 }
  0xe0   : > { %376 = vmatprep.subr.mxu1 %v249_v32  ;;  %300 = vmatpush1.msra.mxu0 %v246_v33 }
  0xe1   : > { %377 = vmatpush1.msra.mxu1 %v248_v34  ;;  %301 = vmatprep.subr.mxu0 %v243_v35 }
  0xe2   : > { %378 = vmatprep.subr.mxu1 %v245_v36  ;;  %302 = vmatpush1.msra.mxu0 %v242_v37 }
  0xe3   : > { %379 = vmatpush1.msra.mxu1 %v244_v38  ;;  %633 = vmatmul.mubr.msk.f32.vlgmr.msra.gmra.mxu0 %vm264_vm2, %v250_v39 }
  0xe4   : > { %635 = vmatmul.mubr.msk.f32.vlgmr.msra.gmra.mxu1 %vm264_vm2, %v250_v39  ;;  %341 = vmatprep.mubr.f32.mxu0 %v715_v0 }
  0xe5   : > { %418 = vmatprep.mubr.f32.mxu1 %v715_v0 }
  0xe7   : > { %634 = vmatmul.mubr.msk.f32.gmra.mxu0 %vm264_vm2, %v251_v40 }
  0xe8   : > { %636 = vmatmul.mubr.msk.f32.gmra.mxu1 %vm264_vm2, %v251_v40  ;;  %507 = vmatprep.mubr.f32.mxu0 %v715_v0 }
  0xe9   : > { %578 = vmatprep.mubr.f32.mxu1 %v715_v0 }
 0x1a3   : > { %v337_v42 = vpop.f32.mrf.mxu0 }
 0x1a4   : > { %v414_v43 = vpop.f32.mrf.mxu1  ;;  %v338_v57 = vadd.f32 %v337_v42, %v257_v48 }
 0x1a5   : > { %v339_v44 = vpop.f32.mrf.mxu0  ;;  %v415_v58 = vadd.f32 %v414_v43, %v257_v48 }
 0x1a6   : > { %v416_v45 = vpop.f32.mrf.mxu1  ;;  %v340_v53 = vadd.f32 %v339_v44, %v257_v48  ;;  %v425_v1 = vmax.f32 %v338_v57, 0.0 }
 0x1a7   : > { %v343_v46 = vpop.f32.mrf.mxu0  ;;  %v417_v54 = vadd.f32 %v416_v45, %v257_v48  ;;  %v427_v2 = vmax.f32 %v415_v58, 0.0 }
 0x1a8   : > { %v420_v47 = vpop.f32.mrf.mxu1  ;;  %v344_v49 = vadd.f32 %v343_v46, %v262_v41  ;;  %v426_v63 = vmax.f32 %v340_v53, 0.0 }
 0x1a9   : > { %v421_v50 = vadd.f32 %v420_v47, %v262_v41  ;;  %v345_v51 = vpop.f32.mrf.mxu0  ;;  %v428_v0 = vmax.f32 %v417_v54, 0.0 }
 0x1aa   : > { %v422_v52 = vpop.f32.mrf.mxu1  ;;  %v346_v55 = vadd.f32 %v345_v51, %v262_v41  ;;  %v429_v61 = vmax.f32 %v344_v49, 0.0 }
 0x1ab   : > { %v423_v56 = vadd.f32 %v422_v52, %v262_v41  ;;  %v431_v62 = vmax.f32 %v421_v50, 0.0 }
 0x1ac   : > { %v430_v59 = vmax.f32 %v346_v55, 0.0 }
 0x1ad   : > { %v432_v60 = vmax.f32 %v423_v56, 0.0 }
 0x1ae   : > { %471 = vmatprep.subr.mxu0 %v430_v59 }
 0x1af   : > { %542 = vmatprep.subr.mxu1 %v432_v60  ;;  %472 = vmatpush1.msra.mxu0 %v429_v61 }
 0x1b0   : > { %543 = vmatpush1.msra.mxu1 %v431_v62  ;;  %473 = vmatprep.subr.mxu0 %v426_v63 }
 0x1b1   : > { %544 = vmatprep.subr.mxu1 %v428_v0  ;;  %474 = vmatpush1.msra.mxu0 %v425_v1 }
 0x1b2   : > { %545 = vmatpush1.msra.mxu1 %v427_v2  ;;  %637 = vmatmul.mubr.msk.f32.vlgmr.msra.gmra.mxu0 %vm264_vm2, %v433_v3 }
 0x1b3   : > { %638 = vmatmul.mubr.msk.f32.vlgmr.msra.gmra.mxu1 %vm264_vm2, %v433_v3 }
 0x272   : > { %v509_v4 = vpop.f32.mrf.mxu0 }
 0x273   : > { %v580_v5 = vpop.f32.mrf.mxu1  ;;  %v510_v9 = vadd.f32 %v509_v4, %v438_v6 }
 0x274   : > { %v511_v7 = vpop.f32.mrf.mxu0  ;;  %v581_v10 = vadd.f32 %v580_v5, %v438_v6 }
 0x275   : > { %v582_v8 = vpop.f32.mrf.mxu1  ;;  %v512_v11 = vadd.f32 %v511_v7, %v438_v6 }
 0x276   : > { %v583_v12 = vadd.f32 %v582_v8, %v438_v6  ;;  %45 = sbr.rel (!%p43_p5) target bundleno = 15 (0xf), region = 61 }
 0x277   : > { %v589_v13 = vcombine.low %v510_v9, %v512_v11 }
 0x278   : > { %v590_v14 = vcombine.low %v581_v10, %v583_v12 }
 0x279   : > { %595 = vst [vmem:[%s594_s29] sm:$0x77] %v589_v13 }
 0x27a   : > { %596 = vst [vmem:[%s594_s29 + $0x8] sm:$0x77] %v590_v14 }
 0x27b   :  { %691 = shalt.err (!%p688_p10)
}
 0x27c   :  { %s718_s3 = smov 256   ;;  %s719_s11 = smov 16  }
 0x27d   :  { %608 = dma.vmem_to_hbm [thread:$0]  %s603_s9, 512, %s830_s7, [#allocation4], %s718_s3, %s718_s3, %s719_s11  }
 0x27e   :  { %706 = dma.done.wait [#allocation4], 512  }
 0x27f   :  { %707 = vsyncadd [#allocation4], 4294966784 }
 0x280   :  { %612 = vsyncpa [#allocation3], 1 }
 0x281   :  { %613 = vsyncpa [#allocation4], 1 }

</bundles_post_ra>
